<compile_context>
chip_gen: v7x
topology: tpu7x:2x2x1
jax: 0.10.0
libtpu: 0.0.40
codegen_flags: <defaults>
</compile_context>

<pallas_src>
import jax
import jax.numpy as jnp
from jax.experimental import pallas as pl
from jax.experimental.pallas import tpu as pltpu

LAYER_SIZES = [294, 160, 64]  # as in the PyTorch module default


def _round_up(a, m):
    return (a + m - 1) // m * m


def bayesian_mlp_kernel(x_ref, w1t_ref, c_ref, o_ref):
    """Fused Bayesian MLP (fc folded into layer 2), batch-major layout.

    x_ref   : (TILE_B, 294) bf16   input tile (batch on the sublane axis)
    w1t_ref : (294, 160)    bf16   sampled W1, pre-transposed (MXU RHS), VMEM-resident
    c_ref   : (3, 160)      f32    row 0 = b1, row 1 = wfc @ W2, row 2[0] = wfc @ b2
    o_ref   : (TILE_B, 1)   f32    output tile
    """
    # Layer 0 (294 -> 160) on the MXU, f32 accumulation.
    h = jnp.dot(x_ref[...], w1t_ref[...], preferred_element_type=jnp.float32)  # (TB, 160)
    # + b1, ReLU (f32 epilogue on the VPU).
    h = jnp.maximum(h + c_ref[0:1, :], 0.0)
    # Folded layer 1 + fc: VPU multiply + 160-lane reduce + scalar bias.
    o_ref[...] = jnp.sum(h * c_ref[1:2, :], axis=1, keepdims=True) + c_ref[2:3, 0:1]


def bayesian_network_forward(x, params):
    """x: (B, 294) float32. params: dict of arrays (see _init_params). Returns (B,) float32."""
    B = x.shape[0]
    d0, d1, d2 = LAYER_SIZES

    # ---- weight sampling (batch-independent) hoisted out of the Pallas hot path ----
    sp = jax.nn.softplus  # numerically stable softplus
    w1 = params["w1_mu"] + sp(params["w1_rho"]) * params["w1_eps"]   # (160, 294)
    b1 = params["b1_mu"] + sp(params["b1_rho"]) * params["b1_eps"]   # (160,)
    w2 = params["w2_mu"] + sp(params["w2_rho"]) * params["w2_eps"]   # (64, 160)
    b2 = params["b2_mu"] + sp(params["b2_rho"]) * params["b2_eps"]   # (64,)
    wfc = params["wfc"]                                              # (1, 64)

    # ---- fold fc (bias=False) into layer 2: exact since no nonlinearity between them ----
    w_eff = (wfc @ w2).reshape(d1)          # (160,)
    b_eff = (wfc @ b2).reshape(())          # scalar

    # ---- kernel constants ----
    w1t = w1.T.astype(jnp.bfloat16)         # (294, 160) bf16 MXU RHS
    consts = jnp.zeros((3, d1), jnp.float32)
    consts = consts.at[0, :].set(b1)
    consts = consts.at[1, :].set(w_eff)
    consts = consts.at[2, 0].set(b_eff)

    # ---- batch tiling: big lane-aligned tiles, but keep >= 2 tiles for v7x's 2 TCs ----
    b128 = _round_up(B, 128)
    if b128 <= 128:
        tile_b = 128
    else:
        tile_b = min(2048, _round_up(pl.cdiv(b128, 2), 128))
    b_pad = _round_up(B, tile_b)
    num_tiles = b_pad // tile_b

    # Pad + bf16 cast fused in one wrapper pass (halves the kernel's dominant HBM stream).
    x_p = jnp.pad(x, ((0, b_pad - B), (0, 0))).astype(jnp.bfloat16)   # (b_pad, 294) bf16

    # ---- VMEM budget from the actual footprint (2x headroom), within v5e's 16 MiB default ----
    xblk_bytes = tile_b * d0 * 2                 # one bf16 x tile
    footprint = (2 * xblk_bytes                  # double-buffered x tile
                 + tile_b * d1 * 4               # h1 intermediate
                 + 2 * d0 * d1 * 2               # W1^T (buffered)
                 + 2 * 3 * d1 * 4                # packed constants
                 + 2 * tile_b * 4)               # output tile (double-buffered)
    vmem_limit = max(4 << 20, min(int(_round_up(2 * footprint, 1 << 20)), 16 << 20))

    out = pl.pallas_call(
        bayesian_mlp_kernel,
        out_shape=jax.ShapeDtypeStruct((b_pad, 1), jnp.float32),
        grid=(num_tiles,),
        in_specs=[
            pl.BlockSpec((tile_b, d0), lambda i: (i, 0)),   # x tile (pipelined over batch)
            pl.BlockSpec((d0, d1), lambda i: (0, 0)),       # W1^T (VMEM-resident)
            pl.BlockSpec((3, d1), lambda i: (0, 0)),        # packed b1 / w_eff / b_eff
        ],
        out_specs=pl.BlockSpec((tile_b, 1), lambda i: (i, 0)),
        compiler_params=pltpu.CompilerParams(
            dimension_semantics=("parallel",),
            vmem_limit_bytes=vmem_limit,
        ),
    )(x_p, w1t, consts)

    return out[:B, 0]  # matches .view(-1); padded batch rows are discarded here


def _init_params(key):
    """Deterministic synthetic parameters mimicking a typical BayesianLayer init:
    weight_mu ~ N(0, 0.1), weight_rho ~ U(-5, -4), same for biases; eps ~ N(0, 1)."""
    ks = jax.random.split(key, 16)
    d0, d1, d2 = LAYER_SIZES

    def wmu(k, o, i):
        return 0.1 * jax.random.normal(k, (o, i), jnp.float32)

    def wrho(k, o, i):
        return jax.random.uniform(k, (o, i), jnp.float32, -5.0, -4.0)

    params = {
        # layer 0 (294 -> 160)
        "w1_mu":  wmu(ks[0], d1, d0),
        "w1_rho": wrho(ks[1], d1, d0),
        "w1_eps": jax.random.normal(ks[2], (d1, d0), jnp.float32),
        "b1_mu":  0.1 * jax.random.normal(ks[3], (d1,), jnp.float32),
        "b1_rho": jax.random.uniform(ks[4], (d1,), jnp.float32, -5.0, -4.0),
        "b1_eps": jax.random.normal(ks[5], (d1,), jnp.float32),
        # layer 1 (160 -> 64)
        "w2_mu":  wmu(ks[6], d2, d1),
        "w2_rho": wrho(ks[7], d2, d1),
        "w2_eps": jax.random.normal(ks[8], (d2, d1), jnp.float32),
        "b2_mu":  0.1 * jax.random.normal(ks[9], (d2,), jnp.float32),
        "b2_rho": jax.random.uniform(ks[10], (d2,), jnp.float32, -5.0, -4.0),
        "b2_eps": jax.random.normal(ks[11], (d2,), jnp.float32),
        # fc (bias=False); PyTorch weight shape (1, 64)
        "wfc": (1.0 / jnp.sqrt(d2)) * jax.random.normal(ks[12], (1, d2), jnp.float32),
    }
    return params


def _reference(x, p):
    """Pure-JAX f32 reference of the same forward (unfused, unquantized)."""
    sp = jax.nn.softplus
    w1 = p["w1_mu"] + sp(p["w1_rho"]) * p["w1_eps"]
    b1 = p["b1_mu"] + sp(p["b1_rho"]) * p["b1_eps"]
    h = jnp.maximum(x @ w1.T + b1, 0.0)
    w2 = p["w2_mu"] + sp(p["w2_rho"]) * p["w2_eps"]
    b2 = p["b2_mu"] + sp(p["b2_rho"]) * p["b2_eps"]
    h = h @ w2.T + b2
    return (h @ p["wfc"].T).reshape(-1)


if __name__ == "__main__":
    key = jax.random.PRNGKey(0)
    k_x, k_p = jax.random.split(key)

    B = 8
    x = jax.random.normal(k_x, (B, LAYER_SIZES[0]), jnp.float32)
    params = _init_params(k_p)

    out = bayesian_network_forward(x, params)
    out = jax.block_until_ready(out)

    ref = _reference(x, params)
    assert out.shape == (B,), out.shape
    # bf16 MXU inputs -> relaxed tolerance vs the f32 reference.
    rel_err = jnp.max(jnp.abs(out - ref)) / (jnp.max(jnp.abs(ref)) + 1e-6)
    assert rel_err < 3e-2, (rel_err, out, ref)

    print("KERNEL_OK")
</pallas_src>

<mosaic_0001>
module attributes {stable_mosaic.version = 11 : i64} {
  func.func @bayesian_mlp_kernel(%arg0: i32, %arg1: memref<128x294xbf16, #tpu.memory_space<vmem>>, %arg2: memref<294x160xbf16, #tpu.memory_space<vmem>>, %arg3: memref<3x160xf32, #tpu.memory_space<vmem>>, %arg4: memref<128x1xf32, #tpu.memory_space<vmem>>) attributes {dimension_semantics = [#tpu.dimension_semantics<parallel>], iteration_bounds = array<i64: 1>, scalar_prefetch = 0 : i64, scratch_operands = 0 : i64, tpu.core_type = #tpu.core_type<tc>, window_params = [{transform_indices = @transform_0, window_bounds = array<i64: 128, 294>}, {pipeline_mode = #tpu.pipeline_mode<synchronous>, transform_indices = @transform_1, window_bounds = array<i64: 294, 160>}, {pipeline_mode = #tpu.pipeline_mode<synchronous>, transform_indices = @transform_2, window_bounds = array<i64: 3, 160>}, {transform_indices = @transform_3, window_bounds = array<i64: 128, 1>}]} {
    %c0 = arith.constant 0 : index
    %c0_0 = arith.constant 0 : index
    %0 = vector.load %arg1[%c0, %c0_0] : memref<128x294xbf16, #tpu.memory_space<vmem>>, vector<128x294xbf16>
    %c0_1 = arith.constant 0 : index
    %c0_2 = arith.constant 0 : index
    %1 = vector.load %arg2[%c0_1, %c0_2] : memref<294x160xbf16, #tpu.memory_space<vmem>>, vector<294x160xbf16>
    %cst = arith.constant dense<0.000000e+00> : vector<128x160xf32>
    %2 = tpu.matmul %0, %1, %cst {dimension_numbers = #tpu.dot_dimension_numbers<[1], [0], [0], [1], [0, 0, 1, 1], [], []>} : vector<128x294xbf16>, vector<294x160xbf16>, vector<128x160xf32> -> vector<128x160xf32>
    %c0_3 = arith.constant 0 : index
    %c0_4 = arith.constant 0 : index
    %3 = vector.load %arg3[%c0_3, %c0_4] : memref<3x160xf32, #tpu.memory_space<vmem>>, vector<1x160xf32>
    %4 = vector.broadcast %3 : vector<1x160xf32> to vector<128x160xf32>
    %5 = arith.addf %2, %4 : vector<128x160xf32>
    %cst_5 = arith.constant 0.000000e+00 : f32
    %6 = vector.broadcast %cst_5 : f32 to vector<128x160xf32>
    %7 = arith.maximumf %5, %6 : vector<128x160xf32>
    %c1 = arith.constant 1 : index
    %c0_6 = arith.constant 0 : index
    %8 = vector.load %arg3[%c1, %c0_6] : memref<3x160xf32, #tpu.memory_space<vmem>>, vector<1x160xf32>
    %9 = vector.broadcast %8 : vector<1x160xf32> to vector<128x160xf32>
    %10 = arith.mulf %7, %9 : vector<128x160xf32>
    %cst_7 = arith.constant dense<0.000000e+00> : vector<128xf32>
    %11 = vector.multi_reduction <add>, %10, %cst_7 [1] : vector<128x160xf32> to vector<128xf32>
    %12 = vector.shape_cast %11 : vector<128xf32> to vector<128x1xf32>
    %c2 = arith.constant 2 : index
    %c0_8 = arith.constant 0 : index
    %13 = vector.load %arg3[%c2, %c0_8] : memref<3x160xf32, #tpu.memory_space<vmem>>, vector<1x1xf32>
    %14 = vector.broadcast %13 : vector<1x1xf32> to vector<128x1xf32>
    %15 = arith.addf %12, %14 : vector<128x1xf32>
    %c0_9 = arith.constant 0 : index
    %c0_10 = arith.constant 0 : index
    %16 = vector.load %arg4[%c0_9, %c0_10] : memref<128x1xf32, #tpu.memory_space<vmem>>, vector<128x1xf32>
    tpu.vector_store %arg4[%c0_9, %c0_10], %15 {strides = array<i32>} : memref<128x1xf32, #tpu.memory_space<vmem>>, vector<128x1xf32>,
    return
  }
  func.func @transform_0(%arg0: i32) -> (i32, i32) {
    %c0_i32 = arith.constant 0 : i32
    %c0_i32_0 = arith.constant 0 : i32
    return %arg0, %c0_i32 : i32, i32
  }
  func.func @transform_1(%arg0: i32) -> (i32, i32) {
    %c0_i32 = arith.constant 0 : i32
    %c0_i32_0 = arith.constant 0 : i32
    %c0_i32_1 = arith.constant 0 : i32
    return %c0_i32, %c0_i32_0 : i32, i32
  }
  func.func @transform_2(%arg0: i32) -> (i32, i32) {
    %c0_i32 = arith.constant 0 : i32
    %c0_i32_0 = arith.constant 0 : i32
    %c0_i32_1 = arith.constant 0 : i32
    return %c0_i32, %c0_i32_0 : i32, i32
  }
  func.func @transform_3(%arg0: i32) -> (i32, i32) {
    %c0_i32 = arith.constant 0 : i32
    %c0_i32_0 = arith.constant 0 : i32
    return %arg0, %c0_i32 : i32, i32
  }
}

</mosaic_0001>

<bundles_post_ra>
// kernel: tpu_custom_call.1
= control target key start
LH: loop header
LB: loop body
LE: loop exit
PB: predicated region body
PF: predicated region fallthrough
CT: control target
= control target key end

     0   :  { %v1069_v1 = vmov 0   ;;  %vm426_vm0 = vcmask 1042432   ;;  %vm401_vm1 = vcmask 310272   ;;  %vm736_vm2 = vcmask 261120   ;;  %s1528_s1 = inlined_call_operand.vmem [shape: bf16[294,160], index: 1, kind: input, shape index: {}]   ;;  %s1529_s0 = inlined_call_operand.vmem [shape: bf16[128,294], index: 0, kind: input, shape index: {}]   ;;  %s1530_s2 = inlined_call_operand.vmem [shape: f32[3,160], index: 2, kind: input, shape index: {}]   ;;  %s1531_s3 = inlined_call_operand.vmem [shape: f32[128,1], index: 3, kind: output, shape index: {}]  }
   0x1   :  { %v981_v0 = vld [vmem:[%s1528_s1 + $0x4] ss:$8 sps:$4 sm:$0xff]   ;;  %578 = vmatprep.mubr.bf16.mxu0 %v1069_v1  ;;  %v983_v2 = vld [vmem:[%s1528_s1] ss:$8 sps:$4 sm:$0xff]   ;;  %v984_v3 = vld [vmem:[%s1528_s1 + $0x14] ss:$8 sps:$4 sm:$0xff]  }
   0x2   :  { %433 = vmatprep.subr.bf16.mxu1 %v981_v0  ;;  %v986_v4 = vld [vmem:[%s1528_s1 + $0x10] ss:$8 sps:$4 sm:$0xff]   ;;  %v987_v5 = vld [vmem:[%s1528_s1 + $0x24] ss:$8 sps:$4 sm:$0xff]   ;;  %v989_v6 = vld [vmem:[%s1528_s1 + $0x20] ss:$8 sps:$4 sm:$0xff]  }
   0x3   :  { %434 = vmatpush1.bf16.msra.mxu1 %v983_v2  ;;  %v990_v7 = vld [vmem:[%s1528_s1 + $0x34] ss:$8 sps:$4 sm:$0xff]   ;;  %v992_v8 = vld [vmem:[%s1528_s1 + $0x30] ss:$8 sps:$4 sm:$0xff]   ;;  %v993_v9 = vld [vmem:[%s1528_s1 + $0x44] ss:$8 sps:$4 sm:$0xff]  }
   0x4   :  { %435 = vmatprep.subr.bf16.mxu1 %v984_v3  ;;  %v995_v10 = vld [vmem:[%s1528_s1 + $0x40] ss:$8 sps:$4 sm:$0xff]   ;;  %v996_v11 = vld [vmem:[%s1528_s1 + $0x54] ss:$8 sps:$4 sm:$0xff]   ;;  %v1020_v12 = vld [vmem:[%s1528_s1 + $0x104] ss:$8 sps:$4 sm:$0xff]  }
   0x5   :  { %v998_v13 = vld [vmem:[%s1528_s1 + $0x50] ss:$8 sps:$4 sm:$0xff]   ;;  %v999_v14 = vld [vmem:[%s1528_s1 + $0x64] ss:$8 sps:$4 sm:$0xff]   ;;  %v1024_v15 = vld [vmem:[%s1528_s1 + $0x100] ss:$8 sps:$4 sm:$0xff]   ;;  %546 = vmatprep.subr.bf16.mxu0 %v1020_v12  ;;  %v86_v12 = vlaneseq }
   0x6   :  { %v1026_v16 = vld [vmem:[%s1528_s1 + $0x114] ss:$8 sps:$4 sm:$0xff]   ;;  %547 = vmatpush1.bf16.msra.mxu0 %v1024_v15  ;;  %v1030_v17 = vld [vmem:[%s1528_s1 + $0x110] ss:$8 sps:$4 sm:$0xff]   ;;  %v83_v18 = vld [vmem:[%s1528_s1 + $0x120] sm:$0x77] }
   0x7   :  { %436 = vmatpush1.bf16.msra.mxu1 %v986_v4  ;;  %548 = vmatprep.subr.bf16.mxu0 %v1026_v16  ;;  %v1001_v19 = vld [vmem:[%s1528_s1 + $0x60] ss:$8 sps:$4 sm:$0xff]   ;;  %v904_v20 = vcombine.high %v83_v18, %v83_v18  ;;  %v903_v21 = vcombine.low %v83_v18, %v83_v18  ;;  %v1002_v22 = vld [vmem:[%s1528_s1 + $0x74] ss:$8 sps:$4 sm:$0xff]   ;;  %v1039_v23 = vld [vmem:[%s1529_s0 + $0x4] ss:$12 sps:$4 sm:$0xff]  }
   0x8   :  { %437 = vmatprep.subr.bf16.mxu1 %v987_v5  ;;  %v1004_v25 = vld [vmem:[%s1528_s1 + $0x70] ss:$8 sps:$4 sm:$0xff]   ;;  %465 = vmatprep.mubr.bf16.mxu1 %v1039_v23  ;;  %v1005_v26 = vld [vmem:[%s1528_s1 + $0x84] ss:$8 sps:$4 sm:$0xff]   ;;  %v1040_v27 = vld [vmem:[%s1529_s0 + $0x8] ss:$12 sps:$4 sm:$0xff]  }
   0x9   :  { %v428_v24 = vsel %vm426_vm0, %v903_v21, 0  ;;  %v1007_v28 = vld [vmem:[%s1528_s1 + $0x80] ss:$8 sps:$4 sm:$0xff]   ;;  %v1008_v29 = vld [vmem:[%s1528_s1 + $0x94] ss:$8 sps:$4 sm:$0xff]   ;;  %vm822_vm3 = vcmask 7168  }
   0xa   :  { %549 = vmatpush1.bf16.msra.mxu0 %v1030_v17  ;;  %v1010_v30 = vld [vmem:[%s1528_s1 + $0x90] ss:$8 sps:$4 sm:$0xff]   ;;  %v1011_v31 = vld [vmem:[%s1528_s1 + $0xa4] ss:$8 sps:$4 sm:$0xff]   ;;  %v1013_v33 = vld [vmem:[%s1528_s1 + $0xa0] ss:$8 sps:$4 sm:$0xff]  }
   0xb   :  { %438 = vmatpush1.bf16.msra.mxu1 %v989_v6  ;;  %905 = vmatprep.subr.msk.bf16.mxu0 %vm426_vm0, %v904_v20  ;;  %v1043_v32 = vld [vmem:[%s1529_s0 + $0x20] ss:$12 sps:$4 sm:$0xff]   ;;  %v1014_v34 = vld [vmem:[%s1528_s1 + $0xb4] ss:$8 sps:$4 sm:$0xff]   ;;  %v1016_v35 = vld [vmem:[%s1528_s1 + $0xb0] ss:$8 sps:$4 sm:$0xff]  }
   0xc   :  { %439 = vmatprep.subr.bf16.mxu1 %v990_v7  ;;  %v1017_v36 = vld [vmem:[%s1528_s1 + $0xc4] ss:$8 sps:$4 sm:$0xff]   ;;  %v1019_v38 = vld [vmem:[%s1528_s1 + $0xc0] ss:$8 sps:$4 sm:$0xff]   ;;  %v1022_v39 = vld [vmem:[%s1528_s1 + $0xd4] ss:$8 sps:$4 sm:$0xff]  }
   0xd   :  { %v1047_v37 = vld [vmem:[%s1529_s0 + $0x38] ss:$12 sps:$4 sm:$0xff]   ;;  %v1051_v42 = vld [vmem:[%s1529_s0 + $0x50] ss:$12 sps:$4 sm:$0xff]   ;;  %v1031_v43 = vld [vmem:[%s1528_s1 + $0xe0] ss:$8 sps:$4 sm:$0xff]  }
   0xe   :  { %551 = vmatpush1.bf16.msra.mxu0 %v428_v24  ;;  %v1025_v40 = vld [vmem:[%s1528_s1 + $0xd0] ss:$8 sps:$4 sm:$0xff]   ;;  %v1028_v41 = vld [vmem:[%s1528_s1 + $0xe4] ss:$8 sps:$4 sm:$0xff]   ;;  %v1033_v44 = vld [vmem:[%s1528_s1 + $0xf4] ss:$8 sps:$4 sm:$0xff]  }
   0xf   :  { %440 = vmatpush1.bf16.msra.mxu1 %v992_v8  ;;  %v1036_v45 = vld [vmem:[%s1528_s1 + $0xf0] ss:$8 sps:$4 sm:$0xff]   ;;  %v1055_v46 = vld [vmem:[%s1529_s0 + $0x68] ss:$12 sps:$4 sm:$0xff]   ;;  %v1037_v47 = vld [vmem:[%s1529_s0] ss:$12 sps:$4 sm:$0xff]  }
  0x10   :  { %441 = vmatprep.subr.bf16.mxu1 %v993_v9  ;;  %v1041_v48 = vld [vmem:[%s1529_s0 + $0x1c] ss:$12 sps:$4 sm:$0xff]   ;;  %v1059_v49 = vld [vmem:[%s1529_s0 + $0x80] ss:$12 sps:$4 sm:$0xff]   ;;  %v1044_v50 = vld [vmem:[%s1529_s0 + $0x18] ss:$12 sps:$4 sm:$0xff]  }
  0x11   :  { %906 = vmatmul.mubr.msk.bf16.vlgmr.msra.gmra.mrb[0].mxu0 %vm401_vm1, %v1040_v27  ;;  %v1045_v51 = vld [vmem:[%s1529_s0 + $0x34] ss:$12 sps:$4 sm:$0xff]   ;;  %v1063_v52 = vld [vmem:[%s1529_s0 + $0x98] ss:$12 sps:$4 sm:$0xff]   ;;  %v1048_v53 = vld [vmem:[%s1529_s0 + $0x30] ss:$12 sps:$4 sm:$0xff]  }
  0x12   :  { %588 = vmatprep.mubr.bf16.mxu0 %v1069_v1  ;;  %v1049_v54 = vld [vmem:[%s1529_s0 + $0x4c] ss:$12 sps:$4 sm:$0xff]   ;;  %v1067_v55 = vld [vmem:[%s1529_s0 + $0xb0] ss:$12 sps:$4 sm:$0xff]   ;;  %v1052_v56 = vld [vmem:[%s1529_s0 + $0x48] ss:$12 sps:$4 sm:$0xff]  }
  0x13   :  { %442 = vmatpush1.bf16.msra.mxu1 %v995_v10  ;;  %v1053_v57 = vld [vmem:[%s1529_s0 + $0x64] ss:$12 sps:$4 sm:$0xff]   ;;  %v1056_v58 = vld [vmem:[%s1529_s0 + $0x60] ss:$12 sps:$4 sm:$0xff]   ;;  %v1057_v59 = vld [vmem:[%s1529_s0 + $0x7c] ss:$12 sps:$4 sm:$0xff]  }
  0x14   :  { %443 = vmatprep.subr.bf16.mxu1 %v996_v11  ;;  %v1060_v60 = vld [vmem:[%s1529_s0 + $0x78] ss:$12 sps:$4 sm:$0xff]   ;;  %v1061_v61 = vld [vmem:[%s1529_s0 + $0x94] ss:$12 sps:$4 sm:$0xff]   ;;  %v1064_v62 = vld [vmem:[%s1529_s0 + $0x90] ss:$12 sps:$4 sm:$0xff]  }
  0x15   :  { %v1065_v63 = vld [vmem:[%s1529_s0 + $0xac] ss:$12 sps:$4 sm:$0xff]   ;;  %v1068_v0 = vld [vmem:[%s1529_s0 + $0xa8] ss:$12 sps:$4 sm:$0xff]  }
  0x16   :  { %v84_v20 = vld [vmem:[%s1530_s2] ss:$4 sm:$0x3] }
  0x17   :  { %444 = vmatpush1.bf16.msra.mxu1 %v998_v13 }
  0x18   :  { %445 = vmatprep.subr.bf16.mxu1 %v999_v14  ;;  %v87_v14 = vshrl.u32 %v86_v12, 7 }
  0x19   :  { %907 = vmatmul.mubr.msk.bf16.gmra.mrb[4].mxu0 %vm401_vm1, %v1043_v32 }
  0x1a   :  { %598 = vmatprep.mubr.bf16.mxu0 %v1069_v1  ;;  %v88_v18 = vsub.s32 0, %v87_v14  ;;  %v92_v21 = vsub.s32 1, %v87_v14 }
  0x1b   :  { %446 = vmatpush1.bf16.msra.mxu1 %v1001_v19 }
  0x1c   :  { %447 = vmatprep.subr.bf16.mxu1 %v1002_v22  ;;  %v1312_v22 = vrot.slane %v84_v20, %v88_v18  ;;  %v1314_v23 = vrot.slane %v84_v20, %v92_v21 }
  0x1f   :  { %448 = vmatpush1.bf16.msra.mxu1 %v1004_v25 }
  0x20   :  { %449 = vmatprep.subr.bf16.mxu1 %v1005_v26 }
  0x21   :  { %908 = vmatmul.mubr.msk.bf16.gmra.mrb[8].mxu0 %vm401_vm1, %v1047_v37 }
  0x22   :  { %608 = vmatprep.mubr.bf16.mxu0 %v1069_v1 }
  0x23   :  { %450 = vmatpush1.bf16.msra.mxu1 %v1007_v28 }
  0x24   :  { %451 = vmatprep.subr.bf16.mxu1 %v1008_v29 }
  0x27   :  { %452 = vmatpush1.bf16.msra.mxu1 %v1010_v30  ;;  %v914_v30 = vld [vmem:[%s1530_s2 + $0x1] ss:$4 sm:$0x3] }
  0x28   :  { %453 = vmatprep.subr.bf16.mxu1 %v1011_v31 }
  0x29   :  { %909 = vmatmul.mubr.msk.bf16.gmra.mrb[12].mxu0 %vm401_vm1, %v1051_v42  ;;  %v1333_v42 = vrot.slane %v914_v30, %v88_v18 }
  0x2a   :  { %618 = vmatprep.mubr.bf16.mxu0 %v1069_v1 }
  0x2b   :  { %454 = vmatpush1.bf16.msra.mxu1 %v1013_v33 }
  0x2c   :  { %455 = vmatprep.subr.bf16.mxu1 %v1014_v34 }
  0x2f   :  { %456 = vmatpush1.bf16.msra.mxu1 %v1016_v35 }
  0x30   :  { %457 = vmatprep.subr.bf16.mxu1 %v1017_v36 }
  0x31   :  { %910 = vmatmul.mubr.msk.bf16.gmra.mrb[16].mxu0 %vm401_vm1, %v1055_v46 }
  0x32   :  { %628 = vmatprep.mubr.bf16.mxu0 %v1069_v1 }
  0x33   :  { %458 = vmatpush1.bf16.msra.mxu1 %v1019_v38 }
  0x34   :  { %459 = vmatprep.subr.bf16.mxu1 %v1022_v39  ;;  %v1331_v39 = vrot.slane %v914_v30, %v92_v21 }
  0x37   :  { %460 = vmatpush1.bf16.msra.mxu1 %v1025_v40 }
  0x38   :  { %461 = vmatprep.subr.bf16.mxu1 %v1028_v41 }
  0x39   :  { %911 = vmatmul.mubr.msk.bf16.gmra.mrb[20].mxu0 %vm401_vm1, %v1059_v49 }
  0x3a   :  { %638 = vmatprep.mubr.bf16.mxu0 %v1069_v1 }
  0x3b   :  { %462 = vmatpush1.bf16.msra.mxu1 %v1031_v43 }
  0x3c   :  { %463 = vmatprep.subr.bf16.mxu1 %v1033_v44 }
  0x3f   :  { %464 = vmatpush1.bf16.msra.mxu1 %v1036_v45 }
  0x41   :  { %912 = vmatmul.mubr.msk.bf16.gmra.mrb[24].mxu0 %vm401_vm1, %v1063_v52 }
  0x42   :  { %466 = vmatmul.mubr.bf16.vlgmr.msra.gmra.mrb[0].mxu1 %v1037_v47  ;;  %648 = vmatprep.mubr.bf16.mxu0 %v1069_v1 }
  0x43   :  { %475 = vmatprep.mubr.bf16.mxu1 %v1041_v48 }
  0x49   :  { %913 = vmatmul.mubr.msk.bf16.gmra.mrb[28].mxu0 %vm401_vm1, %v1067_v55 }
  0x4a   :  { %476 = vmatmul.mubr.bf16.gmra.mrb[4].mxu1 %v1044_v50 }
  0x4b   :  { %485 = vmatprep.mubr.bf16.mxu1 %v1045_v51 }
  0x52   :  { %486 = vmatmul.mubr.bf16.gmra.mrb[8].mxu1 %v1048_v53 }
  0x53   :  { %495 = vmatprep.mubr.bf16.mxu1 %v1049_v54 }
  0x5a   :  { %496 = vmatmul.mubr.bf16.gmra.mrb[12].mxu1 %v1052_v56 }
  0x5b   :  { %505 = vmatprep.mubr.bf16.mxu1 %v1053_v57 }
  0x62   :  { %506 = vmatmul.mubr.bf16.gmra.mrb[16].mxu1 %v1056_v58 }
  0x63   :  { %515 = vmatprep.mubr.bf16.mxu1 %v1057_v59 }
  0x6a   :  { %516 = vmatmul.mubr.bf16.gmra.mrb[20].mxu1 %v1060_v60 }
  0x6b   :  { %525 = vmatprep.mubr.bf16.mxu1 %v1061_v61 }
  0x72   :  { %526 = vmatmul.mubr.bf16.gmra.mrb[24].mxu1 %v1064_v62 }
  0x73   :  { %535 = vmatprep.mubr.bf16.mxu1 %v1065_v63 }
  0x7a   :  { %536 = vmatmul.mubr.bf16.gmra.mrb[28].mxu1 %v1068_v0 }
  0xe4   :  { %v580_v1 = vpop.f32.mrb[0].mxu0 }
  0xe5   :  { %v582_v2 = vpop.f32.mrb[1].mxu0 }
  0xe6   :  { %v584_v3 = vpop.f32.mrb[2].mxu0 }
  0xe7   :  { %v586_v4 = vpop.f32.mrb[3].mxu0 }
  0xec   :  { %v590_v5 = vpop.f32.mrb[4].mxu0 }
  0xed   :  { %v592_v6 = vpop.f32.mrb[5].mxu0 }
  0xee   :  { %v1289_v7 = vpop.f32.mrb[6].mxu0 }
  0xef   :  { %v1291_v8 = vpop.f32.mrb[7].mxu0 }
  0xf4   :  { %v1293_v9 = vpop.f32.mrb[8].mxu0 }
  0xf5   :  { %v1295_v10 = vpop.f32.mrb[9].mxu0 }
  0xf6   :  { %v1297_v11 = vpop.f32.mrb[10].mxu0 }
  0xf7   :  { %v1299_v13 = vpop.f32.mrb[11].mxu0 }
  0xfc   :  { %v1301_v15 = vpop.f32.mrb[12].mxu0 }
  0xfd   :  { %v1303_v16 = vpop.f32.mrb[13].mxu0 }
  0xfe   :  { %v1305_v17 = vpop.f32.mrb[14].mxu0 }
  0xff   :  { %v1307_v19 = vpop.f32.mrb[15].mxu0 }
 0x104   :  { %v1316_v24 = vpop.f32.mrb[16].mxu0 }
 0x105   :  { %v1318_v25 = vpop.f32.mrb[17].mxu0 }
 0x106   :  { %v1320_v27 = vpop.f32.mrb[18].mxu0 }
 0x107   :  { %v1326_v31 = vpop.f32.mrb[19].mxu0 }
 0x10c   :  { %v1335_v45 = vpop.f32.mrb[20].mxu0 }
 0x10d   :  { %v1337_v47 = vpop.f32.mrb[21].mxu0 }
 0x10e   :  { %v1340_v51 = vpop.f32.mrb[22].mxu0 }
 0x10f   :  { %v1344_v55 = vpop.f32.mrb[23].mxu0 }
 0x115   :  { %v467_v26 = vpop.f32.mrb[0].mxu1 }
 0x116   :  { %v468_v28 = vadd.f32 %v467_v26, %v1312_v22  ;;  %v469_v29 = vpop.f32.mrb[1].mxu1 }
 0x117   :  { %v470_v32 = vadd.f32 %v469_v29, %v1314_v23  ;;  %v471_v33 = vpop.f32.mrb[2].mxu1 }
 0x118   :  { %v581_v34 = vadd.f32 %v580_v1, %v468_v28  ;;  %v472_v35 = vadd.f32 %v471_v33, %v1312_v22  ;;  %v473_v36 = vpop.f32.mrb[3].mxu1 }
 0x119   :  { %v583_v37 = vadd.f32 %v582_v2, %v470_v32  ;;  %v474_v38 = vadd.f32 %v473_v36, %v1314_v23 }
 0x11a   :  { %v659_v40 = vmax.f32 %v581_v34, 0.0  ;;  %v585_v41 = vadd.f32 %v584_v3, %v472_v35 }
 0x11b   :  { %v660_v43 = vmax.f32 %v583_v37, 0.0  ;;  %v587_v44 = vadd.f32 %v586_v4, %v474_v38 }
 0x11c   :  { %v661_v46 = vmax.f32 %v585_v41, 0.0  ;;  %v704_v54 = vmul.f32 %v1333_v42, %v659_v40 }
 0x11d   :  { %v662_v48 = vmax.f32 %v587_v44, 0.0  ;;  %v477_v49 = vpop.f32.mrb[4].mxu1  ;;  %v705_v50 = vmul.f32 %v1331_v39, %v660_v43 }
 0x11e   :  { %v478_v52 = vadd.f32 %v477_v49, %v1312_v22  ;;  %v479_v53 = vpop.f32.mrb[5].mxu1  ;;  %v706_v0 = vmul.f32 %v1333_v42, %v661_v46 }
 0x11f   :  { %v480_v56 = vadd.f32 %v479_v53, %v1314_v23  ;;  %v481_v57 = vpop.f32.mrb[6].mxu1  ;;  %v737_v58 = vsel %vm736_vm2, %v705_v50, 0.0  ;;  %v707_v59 = vmul.f32 %v1331_v39, %v662_v48 }
 0x120   :  { %v591_v60 = vadd.f32 %v590_v5, %v478_v52  ;;  %v482_v61 = vadd.f32 %v481_v57, %v1312_v22  ;;  %v483_v62 = vpop.f32.mrb[7].mxu1  ;;  %v738_v63 = vadd.f32 %v737_v58, %v704_v54  ;;  %v1355_v5 = vpop.f32.mrb[24].mxu0 }
 0x121   :  { %v593_v1 = vadd.f32 %v592_v6, %v480_v56  ;;  %v484_v2 = vadd.f32 %v483_v62, %v1314_v23  ;;  %v741_v3 = vsel %vm736_vm2, %v707_v59, 0.0  ;;  %v1357_v26 = vpop.f32.mrb[25].mxu0 }
 0x122   :  { %v663_v4 = vmax.f32 %v591_v60, 0.0  ;;  %v595_v12 = vadd.f32 %v1289_v7, %v482_v61  ;;  %739 = vadd.xlane.f32.xlu0 %v738_v63  ;;  %v742_v14 = vadd.f32 %v741_v3, %v706_v0  ;;  %v1360_v30 = vpop.f32.mrb[26].mxu0 }
 0x123   :  { %v664_v18 = vmax.f32 %v593_v1, 0.0  ;;  %v597_v20 = vadd.f32 %v1291_v8, %v484_v2  ;;  %v1364_v34 = vpop.f32.mrb[27].mxu0 }
 0x124   :  { %v665_v21 = vmax.f32 %v595_v12, 0.0  ;;  %v708_v7 = vmul.f32 %v1333_v42, %v663_v4  ;;  %v1377_v56 = vpop.f32.mrb[28].mxu0 }
 0x125   :  { %v666_v28 = vmax.f32 %v597_v20, 0.0  ;;  %v487_v29 = vpop.f32.mrb[8].mxu1  ;;  %v709_v6 = vmul.f32 %v1331_v39, %v664_v18  ;;  %v1379_v58 = vpop.f32.mrb[29].mxu0 }
 0x126   :  { %v488_v32 = vadd.f32 %v487_v29, %v1312_v22  ;;  %v489_v33 = vpop.f32.mrb[9].mxu1  ;;  %743 = vadd.xlane.f32.xlu0 %v742_v14  ;;  %v710_v44 = vmul.f32 %v1333_v42, %v665_v21  ;;  %v1382_v61 = vpop.f32.mrb[30].mxu0 }
 0x127   :  { %v490_v8 = vadd.f32 %v489_v33, %v1314_v23  ;;  %v491_v35 = vpop.f32.mrb[10].mxu1  ;;  %v745_v36 = vsel %vm736_vm2, %v709_v6, 0.0  ;;  %v711_v37 = vmul.f32 %v1331_v39, %v666_v28  ;;  %v1386_v0 = vpop.f32.mrb[31].mxu0 }
 0x128   :  { %v601_v38 = vadd.f32 %v1293_v9, %v488_v32  ;;  %v492_v40 = vadd.f32 %v491_v35, %v1312_v22  ;;  %v493_v41 = vpop.f32.mrb[11].mxu1  ;;  %v746_v43 = vadd.f32 %v745_v36, %v708_v7 }
 0x129   :  { %v603_v46 = vadd.f32 %v1295_v10, %v490_v8  ;;  %v494_v48 = vadd.f32 %v493_v41, %v1314_v23  ;;  %v749_v49 = vsel %vm736_vm2, %v711_v37, 0.0 }
 0x12a   :  { %v667_v50 = vmax.f32 %v601_v38, 0.0  ;;  %v605_v52 = vadd.f32 %v1297_v11, %v492_v40  ;;  %747 = vadd.xlane.f32.xlu1 %v746_v43  ;;  %v750_v53 = vadd.f32 %v749_v49, %v710_v44 }
 0x12b   :  { %v668_v54 = vmax.f32 %v603_v46, 0.0  ;;  %v607_v9 = vadd.f32 %v1299_v13, %v494_v48 }
 0x12c   :  { %v669_v57 = vmax.f32 %v605_v52, 0.0  ;;  %v712_v11 = vmul.f32 %v1333_v42, %v667_v50 }
 0x12d   :  { %v670_v59 = vmax.f32 %v607_v9, 0.0  ;;  %v497_v60 = vpop.f32.mrb[12].mxu1  ;;  %v713_v10 = vmul.f32 %v1331_v39, %v668_v54 }
 0x12e   :  { %v498_v62 = vadd.f32 %v497_v60, %v1312_v22  ;;  %v499_v63 = vpop.f32.mrb[13].mxu1  ;;  %751 = vadd.xlane.f32.xlu1 %v750_v53  ;;  %v714_v20 = vmul.f32 %v1333_v42, %v669_v57 }
 0x12f   :  { %v500_v13 = vadd.f32 %v499_v63, %v1314_v23  ;;  %v501_v1 = vpop.f32.mrb[14].mxu1  ;;  %v753_v2 = vsel %vm736_vm2, %v713_v10, 0.0  ;;  %v715_v3 = vmul.f32 %v1331_v39, %v670_v59 }
 0x130   :  { %v611_v4 = vadd.f32 %v1301_v15, %v498_v62  ;;  %v502_v12 = vadd.f32 %v501_v1, %v1312_v22  ;;  %v503_v14 = vpop.f32.mrb[15].mxu1  ;;  %v754_v18 = vadd.f32 %v753_v2, %v712_v11 }
 0x131   :  { %v613_v21 = vadd.f32 %v1303_v16, %v500_v13  ;;  %v504_v28 = vadd.f32 %v503_v14, %v1314_v23  ;;  %v757_v29 = vsel %vm736_vm2, %v715_v3, 0.0 }
 0x132   :  { %v671_v6 = vmax.f32 %v611_v4, 0.0  ;;  %v615_v32 = vadd.f32 %v1305_v17, %v502_v12  ;;  %755 = vadd.xlane.f32.xlu0 %v754_v18  ;;  %v758_v33 = vadd.f32 %v757_v29, %v714_v20 }
 0x133   :  { %v672_v7 = vmax.f32 %v613_v21, 0.0  ;;  %v617_v15 = vadd.f32 %v1307_v19, %v504_v28 }
 0x134   :  { %v673_v8 = vmax.f32 %v615_v32, 0.0  ;;  %759 = vadd.xlane.f32.xlu1 %v758_v33  ;;  %v716_v40 = vmul.f32 %v1333_v42, %v671_v6 }
 0x135   :  { %v674_v35 = vmax.f32 %v617_v15, 0.0  ;;  %v507_v36 = vpop.f32.mrb[16].mxu1  ;;  %v717_v37 = vmul.f32 %v1331_v39, %v672_v7 }
 0x136   :  { %v508_v16 = vadd.f32 %v507_v36, %v1312_v22  ;;  %v509_v38 = vpop.f32.mrb[17].mxu1  ;;  %v718_v50 = vmul.f32 %v1333_v42, %v673_v8 }
 0x137   :  { %v510_v41 = vadd.f32 %v509_v38, %v1314_v23  ;;  %v511_v43 = vpop.f32.mrb[18].mxu1  ;;  %v761_v17 = vsel %vm736_vm2, %v717_v37, 0.0  ;;  %v719_v44 = vmul.f32 %v1331_v39, %v674_v35 }
 0x138   :  { %v621_v19 = vadd.f32 %v1316_v24, %v508_v16  ;;  %v512_v46 = vadd.f32 %v511_v43, %v1312_v22  ;;  %v513_v48 = vpop.f32.mrb[19].mxu1  ;;  %v762_v49 = vadd.f32 %v761_v17, %v716_v40 }
 0x139   :  { %v623_v52 = vadd.f32 %v1318_v25, %v510_v41  ;;  %v514_v53 = vadd.f32 %v513_v48, %v1314_v23  ;;  %v765_v54 = vsel %vm736_vm2, %v719_v44, 0.0 }
 0x13a   :  { %v675_v9 = vmax.f32 %v621_v19, 0.0  ;;  %v625_v57 = vadd.f32 %v1320_v27, %v512_v46  ;;  %763 = vadd.xlane.f32.xlu0 %v762_v49  ;;  %v766_v59 = vadd.f32 %v765_v54, %v718_v50 }
 0x13b   :  { %v676_v60 = vmax.f32 %v623_v52, 0.0  ;;  %v627_v24 = vadd.f32 %v1326_v31, %v514_v53 }
 0x13c   :  { %v677_v10 = vmax.f32 %v625_v57, 0.0  ;;  %767 = vadd.xlane.f32.xlu1 %v766_v59  ;;  %v720_v1 = vmul.f32 %v1333_v42, %v675_v9 }
 0x13d   :  { %v678_v62 = vmax.f32 %v627_v24, 0.0  ;;  %v517_v63 = vpop.f32.mrb[20].mxu1  ;;  %v721_v11 = vmul.f32 %v1331_v39, %v676_v60 }
 0x13e   :  { %v518_v25 = vadd.f32 %v517_v63, %v1312_v22  ;;  %v519_v13 = vpop.f32.mrb[21].mxu1  ;;  %v722_v20 = vmul.f32 %v1333_v42, %v677_v10 }
 0x13f   :  { %v520_v2 = vadd.f32 %v519_v13, %v1314_v23  ;;  %v521_v3 = vpop.f32.mrb[22].mxu1  ;;  %v769_v27 = vsel %vm736_vm2, %v721_v11, 0.0  ;;  %v723_v4 = vmul.f32 %v1331_v39, %v678_v62 }
 0x140   :  { %v631_v31 = vadd.f32 %v1335_v45, %v518_v25  ;;  %v522_v12 = vadd.f32 %v521_v3, %v1312_v22  ;;  %v523_v14 = vpop.f32.mrb[23].mxu1  ;;  %v770_v18 = vadd.f32 %v769_v27, %v720_v1 }
 0x141   :  { %v633_v21 = vadd.f32 %v1337_v47, %v520_v2  ;;  %v524_v28 = vadd.f32 %v523_v14, %v1314_v23  ;;  %v773_v29 = vsel %vm736_vm2, %v723_v4, 0.0 }
 0x142   :  { %v679_v6 = vmax.f32 %v631_v31, 0.0  ;;  %v635_v32 = vadd.f32 %v1340_v51, %v522_v12  ;;  %771 = vadd.xlane.f32.xlu0 %v770_v18  ;;  %v774_v33 = vadd.f32 %v773_v29, %v722_v20 }
 0x143   :  { %v680_v7 = vmax.f32 %v633_v21, 0.0  ;;  %v637_v45 = vadd.f32 %v1344_v55, %v524_v28 }
 0x144   :  { %v681_v15 = vmax.f32 %v635_v32, 0.0  ;;  %775 = vadd.xlane.f32.xlu1 %v774_v33  ;;  %v724_v16 = vmul.f32 %v1333_v42, %v679_v6 }
 0x145   :  { %v682_v8 = vmax.f32 %v637_v45, 0.0  ;;  %v527_v35 = vpop.f32.mrb[24].mxu1  ;;  %v725_v36 = vmul.f32 %v1331_v39, %v680_v7 }
 0x146   :  { %v528_v47 = vadd.f32 %v527_v35, %v1312_v22  ;;  %v529_v37 = vpop.f32.mrb[25].mxu1  ;;  %v726_v19 = vmul.f32 %v1333_v42, %v681_v15 }
 0x147   :  { %v530_v38 = vadd.f32 %v529_v37, %v1314_v23  ;;  %v531_v40 = vpop.f32.mrb[26].mxu1  ;;  %v777_v51 = vsel %vm736_vm2, %v725_v36, 0.0  ;;  %v727_v41 = vmul.f32 %v1331_v39, %v682_v8 }
 0x148   :  { %v641_v55 = vadd.f32 %v1355_v5, %v528_v47  ;;  %v532_v43 = vadd.f32 %v531_v40, %v1312_v22  ;;  %v533_v17 = vpop.f32.mrb[27].mxu1  ;;  %v778_v44 = vadd.f32 %v777_v51, %v724_v16 }
 0x149   :  { %v643_v46 = vadd.f32 %v1357_v26, %v530_v38  ;;  %v534_v48 = vadd.f32 %v533_v17, %v1314_v23  ;;  %v781_v49 = vsel %vm736_vm2, %v727_v41, 0.0 }
 0x14a   :  { %v683_v50 = vmax.f32 %v641_v55, 0.0  ;;  %v645_v52 = vadd.f32 %v1360_v30, %v532_v43  ;;  %779 = vadd.xlane.f32.xlu0 %v778_v44  ;;  %v782_v53 = vadd.f32 %v781_v49, %v726_v19 }
 0x14b   :  { %v684_v54 = vmax.f32 %v643_v46, 0.0  ;;  %v647_v5 = vadd.f32 %v1364_v34, %v534_v48 }
 0x14c   :  { %v685_v9 = vmax.f32 %v645_v52, 0.0  ;;  %783 = vadd.xlane.f32.xlu1 %v782_v53  ;;  %v728_v10 = vmul.f32 %v1333_v42, %v683_v50 }
 0x14d   :  { %v686_v57 = vmax.f32 %v647_v5, 0.0  ;;  %v537_v59 = vpop.f32.mrb[28].mxu1  ;;  %v729_v60 = vmul.f32 %v1331_v39, %v684_v54 }
 0x14e   :  { %v538_v26 = vadd.f32 %v537_v59, %v1312_v22  ;;  %v539_v24 = vpop.f32.mrb[29].mxu1  ;;  %v730_v2 = vmul.f32 %v1333_v42, %v685_v9 }
 0x14f   :  { %v540_v62 = vadd.f32 %v539_v24, %v1314_v23  ;;  %v541_v63 = vpop.f32.mrb[30].mxu1  ;;  %v785_v30 = vsel %vm736_vm2, %v729_v60, 0.0  ;;  %v731_v11 = vmul.f32 %v1331_v39, %v686_v57 }
 0x150   :  { %v651_v34 = vadd.f32 %v1377_v56, %v538_v26  ;;  %v542_v25 = vadd.f32 %v541_v63, %v1312_v22  ;;  %v543_v13 = vpop.f32.mrb[31].mxu1  ;;  %v786_v1 = vadd.f32 %v785_v30, %v728_v10 }
 0x151   :  { %v653_v3 = vadd.f32 %v1379_v58, %v540_v62  ;;  %v544_v27 = vadd.f32 %v543_v13, %v1314_v23  ;;  %v789_v4 = vsel %vm736_vm2, %v731_v11, 0.0 }
 0x152   :  { %v687_v31 = vmax.f32 %v651_v34, 0.0  ;;  %v655_v12 = vadd.f32 %v1382_v61, %v542_v25  ;;  %787 = vadd.xlane.f32.xlu0 %v786_v1  ;;  %v790_v14 = vadd.f32 %v789_v4, %v730_v2 }
 0x153   :  { %v688_v18 = vmax.f32 %v653_v3, 0.0  ;;  %v657_v56 = vadd.f32 %v1386_v0, %v544_v27  ;;  %v915_v0 = vld [vmem:[%s1530_s2 + $0x2] ss:$0 sm:$0xff] }
 0x154   :  { %v689_v20 = vmax.f32 %v655_v12, 0.0  ;;  %791 = vadd.xlane.f32.xlu1 %v790_v14  ;;  %v732_v28 = vmul.f32 %v1333_v42, %v687_v31 }
 0x155   :  { %v690_v22 = vmax.f32 %v657_v56, 0.0  ;;  %v733_v21 = vmul.f32 %v1331_v39, %v688_v18 }
 0x156   :  { %v734_v6 = vmul.f32 %v1333_v42, %v689_v20 }
 0x157   :  { %v793_v58 = vsel %vm736_vm2, %v733_v21, 0.0  ;;  %v735_v23 = vmul.f32 %v1331_v39, %v690_v22 }
 0x158   :  { %v794_v29 = vadd.f32 %v793_v58, %v732_v28 }
 0x159   :  { %v797_v61 = vsel %vm736_vm2, %v735_v23, 0.0 }
 0x15a   :  { %795 = vadd.xlane.f32.xlu0 %v794_v29  ;;  %v798_v32 = vadd.f32 %v797_v61, %v734_v6 }
 0x15c   :  { %799 = vadd.xlane.f32.xlu1 %v798_v32 }
 0x1af   :  { %v740_v33 = vpop.xlane.xlu0 %739 }
 0x1b0   :  { %v806_v7 = vadd.f32 %v915_v0, %v740_v33 }
 0x1b2   :  { %823 = vst.msk [vmem:[%s1531_s3] sm:$0xff] %vm822_vm3, %v806_v7 }
 0x1b3   :  { %v744_v39 = vpop.xlane.xlu0 %743 }
 0x1b4   :  { %v807_v45 = vadd.f32 %v915_v0, %v744_v39 }
 0x1b6   :  { %824 = vst.msk [vmem:[%s1531_s3 + $0x8] sm:$0xff] %vm822_vm3, %v807_v45 }
 0x1b7   :  { %v748_v42 = vpop.xlane.xlu1 %747 }
 0x1b8   :  { %v808_v15 = vadd.f32 %v915_v0, %v748_v42 }
 0x1ba   :  { %825 = vst.msk [vmem:[%s1531_s3 + $0x10] sm:$0xff] %vm822_vm3, %v808_v15 }
 0x1bb   :  { %v752_v8 = vpop.xlane.xlu1 %751 }
 0x1bc   :  { %v809_v35 = vadd.f32 %v915_v0, %v752_v8 }
 0x1be   :  { %826 = vst.msk [vmem:[%s1531_s3 + $0x18] sm:$0xff] %vm822_vm3, %v809_v35 }
 0x1bf   :  { %v756_v36 = vpop.xlane.xlu0 %755 }
 0x1c0   :  { %v810_v47 = vadd.f32 %v915_v0, %v756_v36 }
 0x1c1   :  { %v760_v37 = vpop.xlane.xlu1 %759 }
 0x1c2   :  { %827 = vst.msk [vmem:[%s1531_s3 + $0x20] sm:$0xff] %vm822_vm3, %v810_v47  ;;  %v811_v16 = vadd.f32 %v915_v0, %v760_v37 }
 0x1c4   :  { %828 = vst.msk [vmem:[%s1531_s3 + $0x28] sm:$0xff] %vm822_vm3, %v811_v16 }
 0x1c7   :  { %v764_v38 = vpop.xlane.xlu0 %763 }
 0x1c8   :  { %v812_v40 = vadd.f32 %v915_v0, %v764_v38 }
 0x1c9   :  { %v768_v51 = vpop.xlane.xlu1 %767 }
 0x1ca   :  { %829 = vst.msk [vmem:[%s1531_s3 + $0x30] sm:$0xff] %vm822_vm3, %v812_v40  ;;  %v813_v41 = vadd.f32 %v915_v0, %v768_v51 }
 0x1cc   :  { %830 = vst.msk [vmem:[%s1531_s3 + $0x38] sm:$0xff] %vm822_vm3, %v813_v41 }
 0x1cf   :  { %v772_v55 = vpop.xlane.xlu0 %771 }
 0x1d0   :  { %v814_v43 = vadd.f32 %v915_v0, %v772_v55 }
 0x1d1   :  { %v776_v17 = vpop.xlane.xlu1 %775 }
 0x1d2   :  { %831 = vst.msk [vmem:[%s1531_s3 + $0x40] sm:$0xff] %vm822_vm3, %v814_v43  ;;  %v815_v44 = vadd.f32 %v915_v0, %v776_v17 }
 0x1d4   :  { %832 = vst.msk [vmem:[%s1531_s3 + $0x48] sm:$0xff] %vm822_vm3, %v815_v44 }
 0x1d7   :  { %v780_v19 = vpop.xlane.xlu0 %779 }
 0x1d8   :  { %v816_v46 = vadd.f32 %v915_v0, %v780_v19 }
 0x1d9   :  { %v784_v48 = vpop.xlane.xlu1 %783 }
 0x1da   :  { %833 = vst.msk [vmem:[%s1531_s3 + $0x50] sm:$0xff] %vm822_vm3, %v816_v46  ;;  %v817_v49 = vadd.f32 %v915_v0, %v784_v48 }
 0x1dc   :  { %834 = vst.msk [vmem:[%s1531_s3 + $0x58] sm:$0xff] %vm822_vm3, %v817_v49 }
 0x1df   :  { %v788_v50 = vpop.xlane.xlu0 %787 }
 0x1e0   :  { %v818_v52 = vadd.f32 %v915_v0, %v788_v50 }
 0x1e1   :  { %v792_v53 = vpop.xlane.xlu1 %791 }
 0x1e2   :  { %835 = vst.msk [vmem:[%s1531_s3 + $0x60] sm:$0xff] %vm822_vm3, %v818_v52  ;;  %v819_v54 = vadd.f32 %v915_v0, %v792_v53 }
 0x1e4   :  { %836 = vst.msk [vmem:[%s1531_s3 + $0x68] sm:$0xff] %vm822_vm3, %v819_v54 }
 0x1e7   :  { %v796_v5 = vpop.xlane.xlu0 %795 }
 0x1e8   :  { %v820_v9 = vadd.f32 %v915_v0, %v796_v5 }
 0x1e9   :  { %v800_v57 = vpop.xlane.xlu1 %799 }
 0x1ea   :  { %837 = vst.msk [vmem:[%s1531_s3 + $0x70] sm:$0xff] %vm822_vm3, %v820_v9  ;;  %v821_v59 = vadd.f32 %v915_v0, %v800_v57 }
 0x1ec   :  { %838 = vst.msk [vmem:[%s1531_s3 + $0x78] sm:$0xff] %vm822_vm3, %v821_v59 }

</bundles_post_ra>
